<compile_context>
chip_gen: v7x
topology: tpu7x:2x2x1
jax: 0.10.0
libtpu: 0.0.40
codegen_flags: <defaults>
</compile_context>

<pallas_src>
import jax
import jax.numpy as jnp
from jax.experimental import pallas as pl
from jax.experimental.pallas import tpu as pltpu


def _normalize_kernel(mean_ref, inv_std_ref, x_ref, o_ref):
    # mean_ref/inv_std_ref: (TM, 1) f32, x_ref/o_ref: (TM, TW) x.dtype.
    # Broadcast is a cheap VPU lane splat; compute happens in f32 (promotion),
    # the store casts back to the output dtype.
    o_ref[...] = ((x_ref[...] - mean_ref[...]) * inv_std_ref[...]).astype(o_ref.dtype)


def _vmem_budget():
    """(physical_vmem_bytes, scoped_limit_bytes) — generation aware, safe fallback."""
    physical = 64 * 1024 * 1024          # conservative default (v7x has 64 MiB/TC)
    try:
        info = pltpu.get_tpu_info()
        physical = int(getattr(info, "vmem_capacity_bytes", physical))
    except Exception:
        pass
    physical = max(physical, 48 * 1024 * 1024)
    # ~3/4 of physical, capped at 64 MiB: v7x(64 MiB) -> 48 MiB, v5e/v6e(128 MiB) -> 64 MiB.
    limit = min(physical * 3 // 4, 64 * 1024 * 1024)
    return physical, limit


def _largest_divisor(n, multiple_of, upper):
    """Largest d with d | n, d % multiple_of == 0, d <= upper. None if none exists."""
    if upper < multiple_of:
        return None
    best = None
    i = 1
    while i * i <= n:
        if n % i == 0:
            for d in (i, n // i):
                if d % multiple_of == 0 and d <= upper and (best is None or d > best):
                    best = d
        i += 1
    return best


def _pick_tiles(nc, hw, bpe, budget_bytes, min_grid_steps=2):
    """Pick (TM, TW) dividing (nc, hw) evenly, respecting the (sublane, 128)
    tiling rules, with the double-buffered footprint (x-in + out + lane-padded
    f32 scale/bias columns) kept within budget_bytes."""
    lane = 128
    sub = 8 * max(1, 4 // bpe)            # sublane multiple: f32->8, bf16->16, int8->32

    # Double-buffered bytes per row of a full-width (TW == HW) block:
    #   2x x-in + 2x out + 2 arrays x 2 bufs of a 128-lane-padded f32 column.
    per_row_full = 4 * hw * bpe + 4 * lane * 4

    min_tm = sub if nc % sub == 0 else nc   # smallest legal row-tile

    if min_tm * per_row_full <= budget_bytes:
        # Preferred: full-width contiguous rows; grow TM up to the budget.
        tw = hw
        if nc % sub == 0:
            max_tm = budget_bytes // per_row_full
            tm = _largest_divisor(nc, sub, min(max_tm, nc)) or nc
            # Keep >= min_grid_steps grid steps (megacore on v7x) when possible.
            if nc // tm < min_grid_steps:
                smaller = _largest_divisor(nc, sub, nc // min_grid_steps)
                if smaller is not None:
                    tm = smaller
        else:
            tm = nc                         # forced full rows (NC not a sublane multiple)
        return tm, tw

    # Even a minimal-row full-width block is over budget -> split the lane dim.
    tm = min_tm
    if hw % lane != 0:
        return tm, hw                       # forced full-width; wrapper bumps vmem limit
    fixed = 4 * tm * lane * 4               # lane-padded f32 scale/bias buffers
    per_col = 4 * tm * bpe                  # x-in + out, double buffered, per lane column
    max_tw = max(lane, (budget_bytes - fixed) // max(1, per_col))
    tw = _largest_divisor(hw, lane, min(max_tw, hw)) or hw
    return tm, tw


def normalize(x, mean, std):
    """(x - mean[None,:,None,None]) / std[None,:,None,None] for NCHW x."""
    N, C, H, W = x.shape
    mean = jnp.asarray(mean, dtype=jnp.float32).reshape(C)
    std = jnp.asarray(std, dtype=jnp.float32).reshape(C)
    inv_std = 1.0 / std                                   # fold divide into multiply

    NC, HW = N * C, H * W
    x2 = x.reshape(NC, HW)                                # lane-dense, free reshape
    mean_col = jnp.tile(mean, N).reshape(NC, 1)           # f32 per-row mean
    inv_col = jnp.tile(inv_std, N).reshape(NC, 1)         # f32 per-row 1/std

    bpe = jnp.dtype(x.dtype).itemsize
    physical, limit = _vmem_budget()
    headroom = 4 * 1024 * 1024
    budget = max(4 * 1024 * 1024, limit - headroom)
    TM, TW = _pick_tiles(NC, HW, bpe, budget)

    # Actual double-buffered footprint; bump the scoped limit if a forced
    # full-dimension block exceeds the default, but never past physical VMEM.
    footprint = 4 * TM * TW * bpe + 4 * TM * 128 * 4
    vmem_limit = int(min(physical - 8 * 1024 * 1024,
                         max(limit, footprint + headroom)))

    grid = (NC // TM, HW // TW)

    out2 = pl.pallas_call(
        _normalize_kernel,
        out_shape=jax.ShapeDtypeStruct((NC, HW), x.dtype),
        grid_spec=pltpu.PrefetchScalarGridSpec(
            num_scalar_prefetch=0,
            grid=grid,
            in_specs=[
                pl.BlockSpec((TM, 1), lambda i, j: (i, 0)),   # per-row mean (f32)
                pl.BlockSpec((TM, 1), lambda i, j: (i, 0)),   # per-row 1/std (f32)
                pl.BlockSpec((TM, TW), lambda i, j: (i, j)),  # x block
            ],
            out_specs=pl.BlockSpec((TM, TW), lambda i, j: (i, j)),
        ),
        compiler_params=pltpu.CompilerParams(
            dimension_semantics=("parallel", "parallel"),
            vmem_limit_bytes=vmem_limit,
        ),
    )(mean_col, inv_col, x2)

    return out2.reshape(N, C, H, W)


if __name__ == "__main__":
    key = jax.random.PRNGKey(0)
    N, C, H, W = 2, 4, 16, 16

    x = jax.random.normal(key, (N, C, H, W), dtype=jnp.float32)
    # Deterministic per-channel "parameters" (analogous to torch.Tensor(mean/std)).
    mean = jnp.array([0.485, 0.456, 0.406, 0.5], dtype=jnp.float32)
    std = jnp.array([0.229, 0.224, 0.225, 0.25], dtype=jnp.float32)

    out = normalize(x, mean, std)
    out = jax.block_until_ready(out)

    # Reference check against plain JAX (mirrors the PyTorch forward exactly).
    # Tolerance slightly loosened: the divide is folded into a reciprocal
    # multiply (~1-2 ulp difference vs. exact divide).
    ref = (x - mean[None, :, None, None]) / std[None, :, None, None]
    assert out.shape == ref.shape and out.dtype == ref.dtype
    assert jnp.allclose(out, ref, atol=1e-5, rtol=1e-5)

    print("KERNEL_OK")
</pallas_src>

<mosaic_0001>
module attributes {stable_mosaic.version = 11 : i64} {
  func.func @_normalize_kernel(%arg0: i32, %arg1: i32, %arg2: memref<8x1xf32, #tpu.memory_space<vmem>>, %arg3: memref<8x1xf32, #tpu.memory_space<vmem>>, %arg4: memref<8x256xf32, #tpu.memory_space<vmem>>, %arg5: memref<8x256xf32, #tpu.memory_space<vmem>>) attributes {dimension_semantics = [#tpu.dimension_semantics<parallel>, #tpu.dimension_semantics<parallel>], iteration_bounds = array<i64: 1, 1>, scalar_prefetch = 0 : i64, scratch_operands = 0 : i64, tpu.core_type = #tpu.core_type<tc>, window_params = [{transform_indices = @transform_0, window_bounds = array<i64: 8, 1>}, {transform_indices = @transform_1, window_bounds = array<i64: 8, 1>}, {transform_indices = @transform_2, window_bounds = array<i64: 8, 256>}, {transform_indices = @transform_3, window_bounds = array<i64: 8, 256>}]} {
    %c0 = arith.constant 0 : index
    %c0_0 = arith.constant 0 : index
    %0 = vector.load %arg4[%c0, %c0_0] : memref<8x256xf32, #tpu.memory_space<vmem>>, vector<8x256xf32>
    %c0_1 = arith.constant 0 : index
    %c0_2 = arith.constant 0 : index
    %1 = vector.load %arg2[%c0_1, %c0_2] : memref<8x1xf32, #tpu.memory_space<vmem>>, vector<8x1xf32>
    %2 = vector.broadcast %1 : vector<8x1xf32> to vector<8x256xf32>
    %3 = arith.subf %0, %2 : vector<8x256xf32>
    %c0_3 = arith.constant 0 : index
    %c0_4 = arith.constant 0 : index
    %4 = vector.load %arg3[%c0_3, %c0_4] : memref<8x1xf32, #tpu.memory_space<vmem>>, vector<8x1xf32>
    %5 = vector.broadcast %4 : vector<8x1xf32> to vector<8x256xf32>
    %6 = arith.mulf %3, %5 : vector<8x256xf32>
    %c0_5 = arith.constant 0 : index
    %c0_6 = arith.constant 0 : index
    %7 = vector.load %arg5[%c0_5, %c0_6] : memref<8x256xf32, #tpu.memory_space<vmem>>, vector<8x256xf32>
    tpu.vector_store %arg5[%c0_5, %c0_6], %6 {strides = array<i32>} : memref<8x256xf32, #tpu.memory_space<vmem>>, vector<8x256xf32>,
    return
  }
  func.func @transform_0(%arg0: i32, %arg1: i32) -> (i32, i32) {
    %c0_i32 = arith.constant 0 : i32
    %c0_i32_0 = arith.constant 0 : i32
    return %arg0, %c0_i32 : i32, i32
  }
  func.func @transform_1(%arg0: i32, %arg1: i32) -> (i32, i32) {
    %c0_i32 = arith.constant 0 : i32
    %c0_i32_0 = arith.constant 0 : i32
    return %arg0, %c0_i32 : i32, i32
  }
  func.func @transform_2(%arg0: i32, %arg1: i32) -> (i32, i32) {
    %c0_i32 = arith.constant 0 : i32
    return %arg0, %arg1 : i32, i32
  }
  func.func @transform_3(%arg0: i32, %arg1: i32) -> (i32, i32) {
    %c0_i32 = arith.constant 0 : i32
    return %arg0, %arg1 : i32, i32
  }
}

</mosaic_0001>

<bundles_post_ra>
// kernel: tpu_custom_call.1
= control target key start
LH: loop header
LB: loop body
LE: loop exit
PB: predicated region body
PF: predicated region fallthrough
CT: control target
= control target key end

     0   :  { %s122_s0 = inlined_call_operand.vmem [shape: f32[8,1], index: 0, kind: input, shape index: {}]   ;;  %s123_s1 = inlined_call_operand.vmem [shape: f32[8,1], index: 1, kind: input, shape index: {}]   ;;  %s124_s2 = inlined_call_operand.vmem [shape: f32[8,256], index: 2, kind: input, shape index: {}]   ;;  %s125_s3 = inlined_call_operand.hbm [shape: f32[8,256], index: 3, kind: output, shape index: {}]  }
   0x1   :  { %v17_v0 = vld [vmem:[%s122_s0] sm:$0xff] }
   0x2   :  { %8 = vsyncpa [#allocation3], 0  ;;  %v76_v1 = vmov 0   ;;  %v25_v2 = vld [vmem:[%s123_s1] sm:$0xff]  ;;  %v16_v5 = vld [vmem:[%s124_s2 + $0x8] sm:$0xff]  ;;  %s77_s20 = smov [#allocation2]  }
   0x3   :  { %51 = vset.pattern.permute.xlu0 %v76_v1  ;;  %v15_v4 = vld [vmem:[%s124_s2] sm:$0xff]  ;;  %s41_s0 = sshll.u32 %s77_s20, 4  ;;  %s42_s0 = int_to_ptr.vmem [resolvable:$true] %s41_s0 }
   0x4   :  { %20 = vperm.xlu0 %51, %v17_v0   ;;  %s52_s1 = scalar_lea.vmem %s42_s0, 256  ;;  %p57_p1 = scmp.lt.s32.totalorder %s42_s0, %s42_s0 }
   0x5   :  { %p53_p0 = scmp.ne.s32.totalorder %s42_s0, %s52_s1  ;;  %p58_p2 = scmp.lt.s32.totalorder %s52_s1, %s52_s1 }
   0x7   :  { %p59_p3 = por %p58_p2, %p57_p1 }
   0x8   :  { %28 = vperm.xlu0 %51, %v25_v2  }
   0x9   :  { %p60_p4 = pnand %p59_p3, %p53_p0 }
  0x83   :  { %v21_v3 = vpop.permute.xlu0 %20 }
  0x84   :  { %v23_v6 = vsub.f32 %v15_v4, %v21_v3  ;;  %v24_v7 = vsub.f32 %v16_v5, %v21_v3 }
  0x87   :  { %v29_v8 = vpop.permute.xlu0 %28 }
  0x88   :  { %v31_v9 = vmul.f32 %v29_v8, %v23_v6  ;;  %v32_v10 = vmul.f32 %v29_v8, %v24_v7 }
  0x8a   :  { %33 = vst [vmem:[#allocation2] sm:$0xff] %v31_v9  ;;  %34 = vst [vmem:[#allocation2 + $0x8] sm:$0xff] %v32_v10 }
  0x8b   :  { %63 = shalt.err (!%p60_p4)
}
  0x8c   :  { %s64_s2 = scalar_lea.hbm %s125_s3, 256 }
  0x8d   :  { %p65_p5 = scmp.ne.s32.totalorder %s125_s3, %s64_s2  ;;  %p68_p6 = scmp.lt.u32.totalorder %s64_s2, %s125_s3 }
  0x8f   :  { %p70_p7 = pnand %p68_p6, %p65_p5 }
  0x91   :  { %73 = shalt.err (!%p70_p7)
}
  0x92   :  { %44 = dma.vmem_to_hbm [thread:$0]  %s42_s0, 256, %s125_s3, [#allocation3]  }
  0x93   :  { %74 = dma.done.wait [#allocation3], 256  }
  0x94   :  { %75 = vsyncadd [#allocation3], 4294967040 }
  0x95   :  { %48 = vsyncpa [#allocation3], 1 }

</bundles_post_ra>
